<compile_context>
chip_gen: v7x
topology: tpu7x:2x2x1
jax: 0.10.0
libtpu: 0.0.40
codegen_flags: <defaults>
</compile_context>

<pallas_src>
import functools

import jax
import jax.numpy as jnp
from jax.experimental import pallas as pl
from jax.experimental.pallas import tpu as pltpu

_C_PAD = 128      # lane width of the cluster half of the fused cluster|decoder matmul
_NEG_BIG = -1e30  # finite mask value baked into the fused bias (avoids inf-inf)


def _recommender_kernel(
    x_ref,
    w1_ref, b1_ref,      # encoder Linear(E -> 128)
    w2_ref, b2_ref,      # encoder Linear(128 -> 64)
    wf_ref, bf_ref,      # fused [cluster(64->C_PAD) | decoder0(64->128)] : (64, 256)
    w4_ref, b4_ref,      # decoder Linear(128 -> E)
    enc_ref, prob_ref, dec_ref,
    *, num_clusters,
):
    x = x_ref[...].astype(jnp.bfloat16)

    # encoder: Linear -> ReLU -> Linear -> ReLU  (bf16 matmul, f32 accumulate)
    h1 = jnp.dot(x, w1_ref[...], preferred_element_type=jnp.float32) + b1_ref[...]
    h1 = jnp.maximum(h1, 0.0)
    enc = jnp.dot(h1.astype(jnp.bfloat16), w2_ref[...],
                  preferred_element_type=jnp.float32) + b2_ref[...]
    enc = jnp.maximum(enc, 0.0)
    enc_ref[...] = enc.astype(enc_ref.dtype)

    enc_b = enc.astype(jnp.bfloat16)

    # fused cluster-head + decoder-first-layer matmul: (TB, 64) @ (64, 256)
    fused = jnp.dot(enc_b, wf_ref[...],
                    preferred_element_type=jnp.float32) + bf_ref[...]

    # softmax over the lane-padded cluster logits; padded lanes carry -1e30 from the
    # bias (weight columns are zero) and underflow to 0 after exp.
    logits = fused[:, :_C_PAD]
    m = jnp.max(logits, axis=1, keepdims=True)
    e = jnp.exp(logits - m)
    s = jnp.sum(e, axis=1, keepdims=True)
    probs = e * pl.reciprocal(s, approx=False)   # exact normalization; EUP, ~free
    prob_ref[...] = probs[:, :num_clusters].astype(prob_ref.dtype)

    # decoder: ReLU -> Linear
    h2 = jnp.maximum(fused[:, _C_PAD:], 0.0)
    dec = jnp.dot(h2.astype(jnp.bfloat16), w4_ref[...],
                  preferred_element_type=jnp.float32) + b4_ref[...]
    dec_ref[...] = dec.astype(dec_ref.dtype)


def _round_up(n, m):
    return ((n + m - 1) // m) * m


def pack_params(params):
    """One-time parameter packing (hoisted out of the per-call wrapper).

    Fuses the cluster head and decoder first layer into a single (64, 256) weight,
    with the softmax lane mask baked into the fused bias.
    """
    wc, bc = params["wc"], params["bc"]
    w3, b3 = params["w3"], params["b3"]
    num_clusters = wc.shape[1]
    assert num_clusters <= _C_PAD
    n_fused = _C_PAD + w3.shape[1]

    wf = jnp.zeros((wc.shape[0], n_fused), wc.dtype)
    wf = wf.at[:, :num_clusters].set(wc).at[:, _C_PAD:].set(w3)
    bf = jnp.full((1, n_fused), _NEG_BIG, jnp.float32)
    bf = bf.at[:, :num_clusters].set(bc).at[:, _C_PAD:].set(b3)

    packed = dict(w1=params["w1"], b1=params["b1"],
                  w2=params["w2"], b2=params["b2"],
                  wf=wf, bf=bf,
                  w4=params["w4"], b4=params["b4"])
    return packed, num_clusters


def secure_image_recommender(x, packed, num_clusters, *, tb_max=2048,
                             out_dtype=jnp.bfloat16):
    """x: (B, embedding_dim) float32.  Returns (encoded, cluster_probs, decoded)."""
    B, E = x.shape

    # Batch tiling: rows-per-step multiple of 8; prefer >= 2 grid steps so the
    # "parallel" batch axis shards across both v7x TensorCores.
    if B > 8:
        TB = min(tb_max, _round_up(pl.cdiv(B, 2), 8))
    else:
        TB = _round_up(max(B, 1), 8)
    B_pad = _round_up(B, TB)
    if B_pad != B:
        x = jnp.pad(x, ((0, B_pad - B), (0, 0)))
    grid = (B_pad // TB,)

    batch_map = lambda i: (i, 0)
    const_map = lambda i: (0, 0)

    def resident(a):
        # Weights/biases use a constant index_map -> stay VMEM-resident across steps.
        # TODO(synk): for very large E on v7x (64 MiB VMEM), add
        # pipeline_mode=pl.Buffered(1) here to avoid double-buffering residents.
        return pl.BlockSpec(a.shape, const_map)

    args = (
        x,
        packed["w1"], packed["b1"],
        packed["w2"], packed["b2"],
        packed["wf"], packed["bf"],
        packed["w4"], packed["b4"],
    )
    in_specs = [pl.BlockSpec((TB, E), batch_map)] + [resident(a) for a in args[1:]]
    out_specs = (
        pl.BlockSpec((TB, 64), batch_map),
        pl.BlockSpec((TB, num_clusters), batch_map),   # full last dim -> legal block
        pl.BlockSpec((TB, E), batch_map),
    )
    out_shape = (
        jax.ShapeDtypeStruct((B_pad, 64), out_dtype),            # encoded
        jax.ShapeDtypeStruct((B_pad, num_clusters), jnp.float32),  # cluster probs
        jax.ShapeDtypeStruct((B_pad, E), out_dtype),              # decoded
    )

    # Explicit VMEM budget: double-buffered x/outputs + resident weights + f32
    # intermediates, with headroom; capped well below any generation's physical VMEM.
    osz = jnp.dtype(out_dtype).itemsize
    io_bytes = TB * (E * 4 + 64 * osz + num_clusters * 4 + E * osz)
    weight_bytes = ((E * 128 + 128 * 64 + 64 * 256 + 128 * E) * 2
                    + (128 + 64 + 256 + E) * 4)
    interm_bytes = TB * (128 + 64 + 256 + 128 + E) * 4
    vmem_limit = int(2 * io_bytes + 2 * weight_bytes + interm_bytes + (8 << 20))
    vmem_limit = min(vmem_limit, 96 << 20)

    matmul_macs = E * 128 + 128 * 64 + 64 * 256 + 128 * E
    cost = pl.CostEstimate(
        flops=2 * B_pad * matmul_macs,
        transcendentals=B_pad * (_C_PAD + 1),
        bytes_accessed=(B_pad * E * 4                                  # x in
                        + B_pad * (64 * osz + num_clusters * 4 + E * osz)  # outputs
                        + matmul_macs * 2                              # bf16 weights
                        + (128 + 64 + 256 + E) * 4),                   # f32 biases
    )

    enc, probs, dec = pl.pallas_call(
        functools.partial(_recommender_kernel, num_clusters=num_clusters),
        grid=grid,
        in_specs=in_specs,
        out_specs=out_specs,
        out_shape=out_shape,
        compiler_params=pltpu.CompilerParams(
            dimension_semantics=("parallel",),
            vmem_limit_bytes=vmem_limit),
        cost_estimate=cost,
    )(*args)

    if B_pad != B:  # only pay the slice when the batch was actually padded
        enc, probs, dec = enc[:B], probs[:B], dec[:B]
    return enc, probs, dec


def init_params(key, embedding_dim=64, num_clusters=3):
    """Deterministic init.  Linear weights stored (in, out) in bf16; biases (1, out) f32."""
    ks = jax.random.split(key, 10)

    def linear(kw, kb, fan_in, fan_out):
        bound = 1.0 / jnp.sqrt(fan_in)
        w = jax.random.uniform(kw, (fan_in, fan_out), jnp.float32, -bound, bound)
        b = jax.random.uniform(kb, (1, fan_out), jnp.float32, -bound, bound)
        return w.astype(jnp.bfloat16), b

    w1, b1 = linear(ks[0], ks[1], embedding_dim, 128)   # encoder[0]
    w2, b2 = linear(ks[2], ks[3], 128, 64)              # encoder[2]
    wc, bc = linear(ks[4], ks[5], 64, num_clusters)     # cluster_assignment
    w3, b3 = linear(ks[6], ks[7], 64, 128)              # decoder[0]
    w4, b4 = linear(ks[8], ks[9], 128, embedding_dim)   # decoder[2]
    # TODO(synk): self.tag_embedding is unused in forward(), so it is not materialized.
    return dict(w1=w1, b1=b1, w2=w2, b2=b2, wc=wc, bc=bc,
                w3=w3, b3=b3, w4=w4, b4=b4)


def _ref_forward(x, params):
    """Pure-JAX reference mirroring the kernel's bf16-matmul / f32-accumulate math."""
    def mm(a, w):
        return jnp.dot(a.astype(jnp.bfloat16), w, preferred_element_type=jnp.float32)

    h1 = jnp.maximum(mm(x, params["w1"]) + params["b1"], 0.0)
    enc = jnp.maximum(mm(h1, params["w2"]) + params["b2"], 0.0)
    probs = jax.nn.softmax(mm(enc, params["wc"]) + params["bc"], axis=1)
    h2 = jnp.maximum(mm(enc, params["w3"]) + params["b3"], 0.0)
    dec = mm(h2, params["w4"]) + params["b4"]
    return enc, probs, dec


if __name__ == "__main__":
    key = jax.random.PRNGKey(0)
    k_params, k_x = jax.random.split(key)

    embedding_dim, num_clusters, batch = 64, 3, 16
    params = init_params(k_params, embedding_dim, num_clusters)
    packed, nc = pack_params(params)
    x = jax.random.normal(k_x, (batch, embedding_dim), jnp.float32)

    encoded, cluster_probs, decoded = secure_image_recommender(x, packed, nc)
    jax.block_until_ready((encoded, cluster_probs, decoded))

    # sanity checks against a pure-JAX reference using the same bf16/f32 recipe
    enc_ref, probs_ref, dec_ref = _ref_forward(x, params)
    assert encoded.shape == (batch, 64)
    assert cluster_probs.shape == (batch, num_clusters)
    assert decoded.shape == (batch, embedding_dim)
    assert jnp.allclose(encoded.astype(jnp.float32), enc_ref, atol=5e-2, rtol=5e-2)
    assert jnp.allclose(cluster_probs, probs_ref, atol=1e-2)
    assert jnp.allclose(decoded.astype(jnp.float32), dec_ref, atol=5e-2, rtol=5e-2)
    assert jnp.allclose(jnp.sum(cluster_probs, axis=1), 1.0, atol=1e-3)

    print("KERNEL_OK")
</pallas_src>

<mosaic_0001>
module attributes {stable_mosaic.version = 11 : i64} {
  func.func @_recommender_kernel(%arg0: i32, %arg1: memref<8x64xf32, #tpu.memory_space<vmem>>, %arg2: memref<64x128xbf16, #tpu.memory_space<vmem>>, %arg3: memref<1x128xf32, #tpu.memory_space<vmem>>, %arg4: memref<128x64xbf16, #tpu.memory_space<vmem>>, %arg5: memref<1x64xf32, #tpu.memory_space<vmem>>, %arg6: memref<64x256xbf16, #tpu.memory_space<vmem>>, %arg7: memref<1x256xf32, #tpu.memory_space<vmem>>, %arg8: memref<128x64xbf16, #tpu.memory_space<vmem>>, %arg9: memref<1x64xf32, #tpu.memory_space<vmem>>, %arg10: memref<8x64xbf16, #tpu.memory_space<vmem>>, %arg11: memref<8x3xf32, #tpu.memory_space<vmem>>, %arg12: memref<8x64xbf16, #tpu.memory_space<vmem>>) attributes {dimension_semantics = [#tpu.dimension_semantics<parallel>], iteration_bounds = array<i64: 2>, scalar_prefetch = 0 : i64, scratch_operands = 0 : i64, tpu.core_type = #tpu.core_type<tc>, window_params = [{transform_indices = @transform_0, window_bounds = array<i64: 8, 64>}, {pipeline_mode = #tpu.pipeline_mode<synchronous>, transform_indices = @transform_1, window_bounds = array<i64: 64, 128>}, {pipeline_mode = #tpu.pipeline_mode<synchronous>, transform_indices = @transform_2, window_bounds = array<i64: 1, 128>}, {pipeline_mode = #tpu.pipeline_mode<synchronous>, transform_indices = @transform_3, window_bounds = array<i64: 128, 64>}, {pipeline_mode = #tpu.pipeline_mode<synchronous>, transform_indices = @transform_4, window_bounds = array<i64: 1, 64>}, {pipeline_mode = #tpu.pipeline_mode<synchronous>, transform_indices = @transform_5, window_bounds = array<i64: 64, 256>}, {pipeline_mode = #tpu.pipeline_mode<synchronous>, transform_indices = @transform_6, window_bounds = array<i64: 1, 256>}, {pipeline_mode = #tpu.pipeline_mode<synchronous>, transform_indices = @transform_7, window_bounds = array<i64: 128, 64>}, {pipeline_mode = #tpu.pipeline_mode<synchronous>, transform_indices = @transform_8, window_bounds = array<i64: 1, 64>}, {transform_indices = @transform_9, window_bounds = array<i64: 8, 64>}, {transform_indices = @transform_10, window_bounds = array<i64: 8, 3>}, {transform_indices = @transform_11, window_bounds = array<i64: 8, 64>}]} {
    %c0 = arith.constant 0 : index
    %c0_0 = arith.constant 0 : index
    %0 = vector.load %arg1[%c0, %c0_0] : memref<8x64xf32, #tpu.memory_space<vmem>>, vector<8x64xf32>
    %1 = arith.truncf %0 : vector<8x64xf32> to vector<8x64xbf16>
    %c0_1 = arith.constant 0 : index
    %c0_2 = arith.constant 0 : index
    %2 = vector.load %arg2[%c0_1, %c0_2] : memref<64x128xbf16, #tpu.memory_space<vmem>>, vector<64x128xbf16>
    %cst = arith.constant dense<0.000000e+00> : vector<8x128xf32>
    %3 = tpu.matmul %1, %2, %cst {dimension_numbers = #tpu.dot_dimension_numbers<[1], [0], [0], [1], [0, 0, 1, 1], [], []>} : vector<8x64xbf16>, vector<64x128xbf16>, vector<8x128xf32> -> vector<8x128xf32>
    %c0_3 = arith.constant 0 : index
    %c0_4 = arith.constant 0 : index
    %4 = vector.load %arg3[%c0_3, %c0_4] : memref<1x128xf32, #tpu.memory_space<vmem>>, vector<1x128xf32>
    %5 = vector.broadcast %4 : vector<1x128xf32> to vector<8x128xf32>
    %6 = arith.addf %3, %5 : vector<8x128xf32>
    %cst_5 = arith.constant 0.000000e+00 : f32
    %7 = vector.broadcast %cst_5 : f32 to vector<8x128xf32>
    %8 = arith.maximumf %6, %7 : vector<8x128xf32>
    %9 = arith.truncf %8 : vector<8x128xf32> to vector<8x128xbf16>
    %c0_6 = arith.constant 0 : index
    %c0_7 = arith.constant 0 : index
    %10 = vector.load %arg4[%c0_6, %c0_7] : memref<128x64xbf16, #tpu.memory_space<vmem>>, vector<128x64xbf16>
    %cst_8 = arith.constant dense<0.000000e+00> : vector<8x64xf32>
    %11 = tpu.matmul %9, %10, %cst_8 {dimension_numbers = #tpu.dot_dimension_numbers<[1], [0], [0], [1], [0, 0, 1, 1], [], []>} : vector<8x128xbf16>, vector<128x64xbf16>, vector<8x64xf32> -> vector<8x64xf32>
    %c0_9 = arith.constant 0 : index
    %c0_10 = arith.constant 0 : index
    %12 = vector.load %arg5[%c0_9, %c0_10] : memref<1x64xf32, #tpu.memory_space<vmem>>, vector<1x64xf32>
    %13 = vector.broadcast %12 : vector<1x64xf32> to vector<8x64xf32>
    %14 = arith.addf %11, %13 : vector<8x64xf32>
    %cst_11 = arith.constant 0.000000e+00 : f32
    %15 = vector.broadcast %cst_11 : f32 to vector<8x64xf32>
    %16 = arith.maximumf %14, %15 : vector<8x64xf32>
    %17 = arith.truncf %16 : vector<8x64xf32> to vector<8x64xbf16>
    %c0_12 = arith.constant 0 : index
    %c0_13 = arith.constant 0 : index
    %18 = vector.load %arg10[%c0_12, %c0_13] : memref<8x64xbf16, #tpu.memory_space<vmem>>, vector<8x64xbf16>
    tpu.vector_store %arg10[%c0_12, %c0_13], %17 {strides = array<i32>} : memref<8x64xbf16, #tpu.memory_space<vmem>>, vector<8x64xbf16>,
    %19 = arith.truncf %16 : vector<8x64xf32> to vector<8x64xbf16>
    %c0_14 = arith.constant 0 : index
    %c0_15 = arith.constant 0 : index
    %20 = vector.load %arg6[%c0_14, %c0_15] : memref<64x256xbf16, #tpu.memory_space<vmem>>, vector<64x256xbf16>
    %cst_16 = arith.constant dense<0.000000e+00> : vector<8x256xf32>
    %21 = tpu.matmul %19, %20, %cst_16 {dimension_numbers = #tpu.dot_dimension_numbers<[1], [0], [0], [1], [0, 0, 1, 1], [], []>} : vector<8x64xbf16>, vector<64x256xbf16>, vector<8x256xf32> -> vector<8x256xf32>
    %c0_17 = arith.constant 0 : index
    %c0_18 = arith.constant 0 : index
    %22 = vector.load %arg7[%c0_17, %c0_18] : memref<1x256xf32, #tpu.memory_space<vmem>>, vector<1x256xf32>
    %23 = vector.broadcast %22 : vector<1x256xf32> to vector<8x256xf32>
    %24 = arith.addf %21, %23 : vector<8x256xf32>
    %25 = vector.extract_strided_slice %24 {offsets = [0, 0], sizes = [8, 128], strides = [1, 1]} : vector<8x256xf32> to vector<8x128xf32>
    %cst_19 = arith.constant dense<0xFF800000> : vector<8xf32>
    %26 = vector.multi_reduction <maximumf>, %25, %cst_19 [1] : vector<8x128xf32> to vector<8xf32>
    %27 = vector.shape_cast %26 : vector<8xf32> to vector<8x1xf32>
    %28 = vector.broadcast %27 : vector<8x1xf32> to vector<8x128xf32>
    %29 = arith.subf %25, %28 : vector<8x128xf32>
    %30 = math.exp %29 : vector<8x128xf32>
    %cst_20 = arith.constant dense<0.000000e+00> : vector<8xf32>
    %31 = vector.multi_reduction <add>, %30, %cst_20 [1] : vector<8x128xf32> to vector<8xf32>
    %32 = vector.shape_cast %31 : vector<8xf32> to vector<8x1xf32>
    %33 = tpu.reciprocal %32 : vector<8x1xf32> -> vector<8x1xf32>
    %34 = vector.broadcast %33 : vector<8x1xf32> to vector<8x128xf32>
    %35 = arith.mulf %30, %34 : vector<8x128xf32>
    %36 = vector.extract_strided_slice %35 {offsets = [0, 0], sizes = [8, 3], strides = [1, 1]} : vector<8x128xf32> to vector<8x3xf32>
    %c0_21 = arith.constant 0 : index
    %c0_22 = arith.constant 0 : index
    %37 = vector.load %arg11[%c0_21, %c0_22] : memref<8x3xf32, #tpu.memory_space<vmem>>, vector<8x3xf32>
    tpu.vector_store %arg11[%c0_21, %c0_22], %36 {strides = array<i32>} : memref<8x3xf32, #tpu.memory_space<vmem>>, vector<8x3xf32>,
    %38 = vector.extract_strided_slice %24 {offsets = [0, 128], sizes = [8, 128], strides = [1, 1]} : vector<8x256xf32> to vector<8x128xf32>
    %cst_23 = arith.constant 0.000000e+00 : f32
    %39 = vector.broadcast %cst_23 : f32 to vector<8x128xf32>
    %40 = arith.maximumf %38, %39 : vector<8x128xf32>
    %41 = arith.truncf %40 : vector<8x128xf32> to vector<8x128xbf16>
    %c0_24 = arith.constant 0 : index
    %c0_25 = arith.constant 0 : index
    %42 = vector.load %arg8[%c0_24, %c0_25] : memref<128x64xbf16, #tpu.memory_space<vmem>>, vector<128x64xbf16>
    %cst_26 = arith.constant dense<0.000000e+00> : vector<8x64xf32>
    %43 = tpu.matmul %41, %42, %cst_26 {dimension_numbers = #tpu.dot_dimension_numbers<[1], [0], [0], [1], [0, 0, 1, 1], [], []>} : vector<8x128xbf16>, vector<128x64xbf16>, vector<8x64xf32> -> vector<8x64xf32>
    %c0_27 = arith.constant 0 : index
    %c0_28 = arith.constant 0 : index
    %44 = vector.load %arg9[%c0_27, %c0_28] : memref<1x64xf32, #tpu.memory_space<vmem>>, vector<1x64xf32>
    %45 = vector.broadcast %44 : vector<1x64xf32> to vector<8x64xf32>
    %46 = arith.addf %43, %45 : vector<8x64xf32>
    %47 = arith.truncf %46 : vector<8x64xf32> to vector<8x64xbf16>
    %c0_29 = arith.constant 0 : index
    %c0_30 = arith.constant 0 : index
    %48 = vector.load %arg12[%c0_29, %c0_30] : memref<8x64xbf16, #tpu.memory_space<vmem>>, vector<8x64xbf16>
    tpu.vector_store %arg12[%c0_29, %c0_30], %47 {strides = array<i32>} : memref<8x64xbf16, #tpu.memory_space<vmem>>, vector<8x64xbf16>,
    return
  }
  func.func @transform_0(%arg0: i32) -> (i32, i32) {
    %c0_i32 = arith.constant 0 : i32
    %c0_i32_0 = arith.constant 0 : i32
    return %arg0, %c0_i32 : i32, i32
  }
  func.func @transform_1(%arg0: i32) -> (i32, i32) {
    %c0_i32 = arith.constant 0 : i32
    %c0_i32_0 = arith.constant 0 : i32
    %c0_i32_1 = arith.constant 0 : i32
    return %c0_i32, %c0_i32_0 : i32, i32
  }
  func.func @transform_2(%arg0: i32) -> (i32, i32) {
    %c0_i32 = arith.constant 0 : i32
    %c0_i32_0 = arith.constant 0 : i32
    %c0_i32_1 = arith.constant 0 : i32
    return %c0_i32, %c0_i32_0 : i32, i32
  }
  func.func @transform_3(%arg0: i32) -> (i32, i32) {
    %c0_i32 = arith.constant 0 : i32
    %c0_i32_0 = arith.constant 0 : i32
    %c0_i32_1 = arith.constant 0 : i32
    return %c0_i32, %c0_i32_0 : i32, i32
  }
  func.func @transform_4(%arg0: i32) -> (i32, i32) {
    %c0_i32 = arith.constant 0 : i32
    %c0_i32_0 = arith.constant 0 : i32
    %c0_i32_1 = arith.constant 0 : i32
    return %c0_i32, %c0_i32_0 : i32, i32
  }
  func.func @transform_5(%arg0: i32) -> (i32, i32) {
    %c0_i32 = arith.constant 0 : i32
    %c0_i32_0 = arith.constant 0 : i32
    %c0_i32_1 = arith.constant 0 : i32
    return %c0_i32, %c0_i32_0 : i32, i32
  }
  func.func @transform_6(%arg0: i32) -> (i32, i32) {
    %c0_i32 = arith.constant 0 : i32
    %c0_i32_0 = arith.constant 0 : i32
    %c0_i32_1 = arith.constant 0 : i32
    return %c0_i32, %c0_i32_0 : i32, i32
  }
  func.func @transform_7(%arg0: i32) -> (i32, i32) {
    %c0_i32 = arith.constant 0 : i32
    %c0_i32_0 = arith.constant 0 : i32
    %c0_i32_1 = arith.constant 0 : i32
    return %c0_i32, %c0_i32_0 : i32, i32
  }
  func.func @transform_8(%arg0: i32) -> (i32, i32) {
    %c0_i32 = arith.constant 0 : i32
    %c0_i32_0 = arith.constant 0 : i32
    %c0_i32_1 = arith.constant 0 : i32
    return %c0_i32, %c0_i32_0 : i32, i32
  }
  func.func @transform_9(%arg0: i32) -> (i32, i32) {
    %c0_i32 = arith.constant 0 : i32
    %c0_i32_0 = arith.constant 0 : i32
    return %arg0, %c0_i32 : i32, i32
  }
  func.func @transform_10(%arg0: i32) -> (i32, i32) {
    %c0_i32 = arith.constant 0 : i32
    %c0_i32_0 = arith.constant 0 : i32
    return %arg0, %c0_i32 : i32, i32
  }
  func.func @transform_11(%arg0: i32) -> (i32, i32) {
    %c0_i32 = arith.constant 0 : i32
    %c0_i32_0 = arith.constant 0 : i32
    return %arg0, %c0_i32 : i32, i32
  }
}

</mosaic_0001>

<bundles_post_ra>
// kernel: tpu_custom_call.1
= control target key start
LH: loop header
LB: loop body
LE: loop exit
PB: predicated region body
PF: predicated region fallthrough
CT: control target
= control target key end

     0   :  { %s1635_s0 = inlined_call_operand.vmem [shape: f32[16,64], index: 0, kind: input, shape index: {}]   ;;  %s1636_s1 = inlined_call_operand.vmem [shape: bf16[64,128], index: 1, kind: input, shape index: {}]   ;;  %s1637_s2 = inlined_call_operand.vmem [shape: f32[1,128], index: 2, kind: input, shape index: {}]   ;;  %s1638_s3 = inlined_call_operand.vmem [shape: bf16[128,64], index: 3, kind: input, shape index: {}]   ;;  %s1639_s4 = inlined_call_operand.vmem [shape: f32[1,64], index: 4, kind: input, shape index: {}]   ;;  %s1640_s5 = inlined_call_operand.vmem [shape: bf16[64,256], index: 5, kind: input, shape index: {}]   ;;  %s1641_s6 = inlined_call_operand.vmem [shape: f32[1,256], index: 6, kind: input, shape index: {}]   ;;  %s1642_s7 = inlined_call_operand.vmem [shape: bf16[128,64], index: 7, kind: input, shape index: {}]   ;;  %s1643_s8 = inlined_call_operand.vmem [shape: f32[1,64], index: 8, kind: input, shape index: {}]   ;;  %s1644_s9 = inlined_call_operand.hbm [shape: bf16[16,64], index: 9, kind: output, shape index: {0}]   ;;  %s1645_s10 = inlined_call_operand.vmem [shape: f32[16,3], index: 10, kind: output, shape index: {1}]   ;;  %s1646_s11 = inlined_call_operand.hbm [shape: bf16[16,64], index: 11, kind: output, shape index: {2}]  }
   0x1   :  { %1650 = sst [smem:[#allocation9_spill]] %s1635_s0 }
   0x2   :  { %1651 = sst [smem:[#allocation10_spill]] %s1636_s1 }
   0x3   :  { %1652 = sst [smem:[#allocation11_spill]] %s1637_s2 }
   0x4   :  { %17 = vsyncpa [#allocation3], 0 }
   0x5   :  { %19 = vsyncpa [#allocation3 + $0x1], 0 }
   0x6   :  { %20 = vsyncpa [#allocation5], 0 }
   0x7   :  { %22 = vsyncpa [#allocation5 + $0x1], 0  ;;  %s1356_s17 = smov 0   ;;  %s1358_s18 = smov 0  }
   0x8   :  { %s1360_s19 = smov 0   ;;  %s1362_s20 = smov 0  }
   0x9 LB: > { %s1377_s21 = sadd.s32 4294967295, %s1289_s20   ;;  %s990_s22 = sadd.s32 4294967294, %s1289_s20   ;;  %s1289_s20 = sphi %s1362_s20, %s1666_s20   ;;  %s1285_s19 = sphi %s1360_s19, %s1665_s19   ;;  %s1281_s18 = sphi %s1358_s18, %s1664_s18   ;;  %s1277_s17 = sphi %s1356_s17, %s1663_s17  }
   0xa   : > { %s1381_s23 = sadd.s32 1, %s1289_s20   ;;  %s229_s24 = sadd.s32 1, %s1285_s19 }
   0xb   : > { %s226_s25 = ssub.s32 %s1289_s20, %s1381_s23  ;;  %p239_p0 = scmp.ne.s32.totalorder %s1285_s19, %s1281_s18 }
   0xc   : > { %p227_p1 = scmp.eq.s32.totalorder %s226_s25, 0  ;;  %p240_p2 = scmp.eq.s32.totalorder %s1377_s21, 1 }
   0xd   : > { %p245_p3 = scmp.ne.s32.totalorder %s1281_s18, %s1277_s17  ;;  %p246_p4 = scmp.eq.s32.totalorder %s990_s22, 1 }
   0xe   : > { %s1392_s26 = scalar_select %p227_p1, %s1285_s19, %s229_s24  }
   0xf   : > { %p1394_p5 = por %p240_p2, %p239_p0  ;;  %p1398_p6 = por %p246_p4, %p245_p3 }
  0x10   : > { %1653 = sst [smem:[#allocation8_spill]] %s1392_s26  ;;  %p993_p7 = scmp.ge.s32.totalorder %s1289_s20, 1 }
  0x11   : > { %p347_p8 = scmp.lt.s32.totalorder %s1289_s20, 3 }
  0x13   : > { %p348_p9 = pnand %p993_p7, %p347_p8 }
  0x14   : > { %s1656_s1 = sld [smem:[#allocation10_spill]] (!%p348_p9)  ;;  %v1291_v1 = vmov (!%p348_p9), 0.0   ;;  %vm1292_vm0 = vmmov (!%p348_p9), 0   ;;  %p395_p10 = scmp.lt.s32.totalorder (!%p348_p9), %s1377_s21, 1  ;;  %v1163_v6 = vld [vmem:[%s1638_s3] sm:$0xff] (!%p348_p9)   ;;  %vm445_vm1 = vcmask (!%p348_p9), 523264   ;;  %v616_v48 = vlaneseq (!%p348_p9) }
  0x15   : > { %351 = sbr.rel (%p348_p9) target bundleno = 1005 (0x3ed), region = 56  ;;  %1060 = vmatprep.subr.bf16.mxu1 (!%p348_p9), %v1291_v1  ;;  %1068 = vmatprep.mubr.msk.bf16.mxu1 (!%p348_p9), %vm1292_vm0, %v1291_v1  ;;  %s1657_s0 = sld [smem:[#allocation9_spill]] (!%p348_p9)  ;;  %v1164_v8 = vld [vmem:[%s1638_s3 + $0x8] sm:$0xff] (!%p348_p9)   ;;  %v1165_v9 = vld [vmem:[%s1638_s3 + $0x10] sm:$0xff] (!%p348_p9)   ;;  %v1166_v10 = vld [vmem:[%s1638_s3 + $0x18] sm:$0xff] (!%p348_p9)   ;;  %v1293_v31 = vmov (!%p348_p9), 0  }
  0x16   : > { %v1167_v11 = vld [vmem:[%s1638_s3 + $0x20] sm:$0xff] (!%p348_p9)   ;;  %v1168_v12 = vld [vmem:[%s1638_s3 + $0x28] sm:$0xff] (!%p348_p9)   ;;  %v1169_v13 = vld [vmem:[%s1638_s3 + $0x30] sm:$0xff] (!%p348_p9)   ;;  %s1658_s2 = sld [smem:[#allocation11_spill]] (!%p348_p9)  ;;  %701 = vmatprep.mubr.bf16.mxu0 (!%p348_p9), %v1293_v31  ;;  %vm604_vm2 = vcmask (!%p348_p9), 519168   ;;  %v617_v49 = vshrl.u32 (!%p348_p9), %v616_v48, 7 }
  0x17   : > { %v1170_v14 = vld [vmem:[%s1638_s3 + $0x38] sm:$0xff] (!%p348_p9)   ;;  %v1171_v15 = vld [vmem:[%s1640_s5 + $0x4] ss:$8 sps:$4 sm:$0xff] (!%p348_p9)   ;;  %v1173_v16 = vld [vmem:[%s1640_s5] ss:$8 sps:$4 sm:$0xff] (!%p348_p9)   ;;  %s1649_s26 = sshll.u32 (!%p348_p9), %s1377_s21, 6 }
  0x18   : > { %v1174_v17 = vld [vmem:[%s1640_s5 + $0x14] ss:$8 sps:$4 sm:$0xff] (!%p348_p9)   ;;  %669 = vmatprep.subr.bf16.mxu0 (!%p348_p9), %v1171_v15  ;;  %v1176_v18 = vld [vmem:[%s1640_s5 + $0x10] ss:$8 sps:$4 sm:$0xff] (!%p348_p9)   ;;  %v1177_v19 = vld [vmem:[%s1640_s5 + $0x24] ss:$8 sps:$4 sm:$0xff] (!%p348_p9)   ;;  %s1555_s12 = scalar_lea.hbm (!%p348_p9), %s1644_s9, %s1649_s26 }
  0x19   : > { %670 = vmatpush1.bf16.msra.mxu0 (!%p348_p9), %v1173_v16  ;;  %v1179_v28 = vld [vmem:[%s1640_s5 + $0x20] ss:$8 sps:$4 sm:$0xff] (!%p348_p9)   ;;  %v1180_v29 = vld [vmem:[%s1640_s5 + $0x34] ss:$8 sps:$4 sm:$0xff] (!%p348_p9)   ;;  %v1182_v30 = vld [vmem:[%s1640_s5 + $0x30] ss:$8 sps:$4 sm:$0xff] (!%p348_p9)  }
  0x1a   : > { %v1159_v0 = vld [vmem:[%s1656_s1] sm:$0xff] (!%p348_p9)   ;;  %v1160_v2 = vld [vmem:[%s1656_s1 + $0x8] sm:$0xff] (!%p348_p9)   ;;  %v1161_v3 = vld [vmem:[%s1656_s1 + $0x10] sm:$0xff] (!%p348_p9)   ;;  %671 = vmatprep.subr.bf16.mxu0 (!%p348_p9), %v1174_v17  ;;  %v618_v50 = vsub.s32 (!%p348_p9), 0, %v617_v49  ;;  %v622_v52 = vsub.s32 (!%p348_p9), 1, %v617_v49 }
  0x1b   : > { %1061 = vmatpush3.bf16.msra.mxu1 (!%p348_p9), %v1159_v0  ;;  %v1162_v4 = vld [vmem:[%s1656_s1 + $0x18] sm:$0xff] (!%p348_p9)   ;;  %v1004_v32 = vld [vmem:[%s1639_s4] ss:$0 sm:$0xff] (!%p348_p9)  ;;  %v1184_v41 = vld [vmem:[%s1642_s7 + $0x8] sm:$0xff] (!%p348_p9)  }
  0x1c   : > { %1062 = vmatprep.subr.bf16.mxu1 %v1291_v1  ;;  %s1416_s14 = scalar_select %p395_p10, %s1377_s21, 1  ;;  %v998_v20 = vld [vmem:[%s1658_s2] ss:$0 sm:$0xff]  ;;  %v1185_v42 = vld [vmem:[%s1642_s7 + $0x10] sm:$0xff]   ;;  %v1186_v43 = vld [vmem:[%s1642_s7 + $0x18] sm:$0xff]  }
  0x1d   : > { %672 = vmatpush1.bf16.msra.mxu0 %v1176_v18  ;;  %v1183_v39 = vld [vmem:[%s1642_s7] sm:$0xff]   ;;  %v1188_v45 = vld [vmem:[%s1642_s7 + $0x28] sm:$0xff]   ;;  %v1189_v46 = vld [vmem:[%s1642_s7 + $0x30] sm:$0xff]  }
  0x1e   : > { %s1647_s22 = sshll.u32 %s1416_s14, 3  ;;  %673 = vmatprep.subr.bf16.mxu0 %v1177_v19  ;;  %v1187_v44 = vld [vmem:[%s1642_s7 + $0x20] sm:$0xff]   ;;  %v1190_v47 = vld [vmem:[%s1642_s7 + $0x38] sm:$0xff]  }
  0x1f   : > { %1063 = vmatpush3.bf16.msra.mxu1 %v1160_v2  ;;  %s398_s29 = scalar_lea.vmem %s1657_s0, %s1647_s22  ;;  %v614_v51 = vld [vmem:[%s1641_s6] sm:$0x3] }
  0x20   : > { %1064 = vmatprep.subr.bf16.mxu1 %v1291_v1  ;;  %v404_v5 = vld [vmem:[%s398_s29] sm:$0xff]  ;;  %s1499_s29 = sand.u32 1, %s1281_s18   ;;  %v619_v53 = vrot.slane %v614_v51, %v618_v50  ;;  %v623_v54 = vrot.slane %v614_v51, %v622_v52 }
  0x21   : > { %v405_v7 = vpack.c.bf16 %v404_v5, %v404_v5  ;;  %674 = vmatpush1.bf16.msra.mxu0 %v1179_v28  ;;  %s1648_s30 = sshll.u32 %s1499_s29, 2  ;;  %s837_s15 = scalar_lea.sflag [#allocation3], %s1499_s29 }
  0x22   : > { %675 = vmatprep.subr.bf16.mxu0 %v1180_v29  ;;  %s1508_s13 = scalar_lea.vmem [#allocation2], %s1648_s30  ;;  %s1294_s30 = smov [#allocation2]  }
  0x23   : > { %1065 = vmatpush3.bf16.msra.mxu1 %v1161_v3  ;;  %s859_s24 = sshll.u32 %s1508_s13, 4  ;;  %s1199_s0 = sshll.u32 %s1294_s30, 4  ;;  %s860_s24 = int_to_ptr.vmem [resolvable:$true] %s859_s24  ;;  %s1200_s0 = int_to_ptr.vmem [resolvable:$false] %s1199_s0 }
  0x24   : > { %1066 = vmatprep.subr.bf16.mxu1 %v1291_v1  ;;  %s1195_s16 = scalar_lea.vmem %s860_s24, 64  ;;  %s1201_s1 = scalar_lea.vmem %s1200_s0, 128 }
  0x25   : > { %676 = vmatpush1.bf16.msra.mxu0 %v1182_v30  ;;  %p1196_p11 = scmp.ne.s32.totalorder %s860_s24, %s1195_s16  ;;  %p1202_p0 = scmp.lt.s32.totalorder %s860_s24, %s1200_s0 }
  0x26   : > { %1092 = vmatprep.subr.bf16.mxu0 %v1291_v1  ;;  %p1203_p1 = scmp.lt.s32.totalorder %s1201_s1, %s1195_s16 }
  0x27   : > { %1067 = vmatpush3.bf16.msra.mxu1 %v1162_v4  ;;  %p1197_p12 = pnand %p1196_p11, %p1394_p5 }
  0x28   : > { %1072 = vmatprep.subr.bf16.mxu1 %v1291_v1  ;;  %p1204_p2 = por %p1203_p1, %p1202_p0 }
  0x29   : > { %p1198_p13 = pneg %p1197_p12 }
  0x2a   : > { %1069 = vmatmul.mubr.msk.bf16.vlgmr.msra.gmra.mrb[0].mxu1 %vm445_vm1, %v405_v7 }
  0x2b   : > { %1073 = vmatpush3.bf16.msra.mxu1 %v1163_v6  ;;  %1088 = vmatprep.mubr.msk.bf16.mxu1 %vm1292_vm0, %v1291_v1  ;;  %p1205_p3 = pnand %p1204_p2, %p1198_p13 }
  0x2c   : > { %1074 = vmatprep.subr.bf16.mxu1 %v1291_v1 }
  0x2f   : > { %1075 = vmatpush3.bf16.msra.mxu1 %v1164_v8 }
  0x30   : > { %1076 = vmatprep.subr.bf16.mxu1 %v1291_v1 }
  0x33   : > { %1077 = vmatpush3.bf16.msra.mxu1 %v1165_v9 }
  0x34   : > { %1078 = vmatprep.subr.bf16.mxu1 %v1291_v1 }
  0x37   : > { %1079 = vmatpush3.bf16.msra.mxu1 %v1166_v10 }
  0x38   : > { %1080 = vmatprep.subr.bf16.mxu1 %v1291_v1 }
  0x3b   : > { %1081 = vmatpush3.bf16.msra.mxu1 %v1167_v11 }
  0x3c   : > { %1082 = vmatprep.subr.bf16.mxu1 %v1291_v1 }
  0x3f   : > { %1083 = vmatpush3.bf16.msra.mxu1 %v1168_v12 }
  0x40   : > { %1084 = vmatprep.subr.bf16.mxu1 %v1291_v1 }
  0x43   : > { %1085 = vmatpush3.bf16.msra.mxu1 %v1169_v13 }
  0x44   : > { %1086 = vmatprep.subr.bf16.mxu1 %v1291_v1 }
  0x47   : > { %1087 = vmatpush3.bf16.msra.mxu1 %v1170_v14 }
  0xfd   : > { %v483_v21 = vpop.f32.mrb[0].mxu1 }
  0xfe   : > { %v484_v22 = vadd.f32 %v998_v20, %v483_v21  ;;  %v1070_v23 = vpop.f32.mrb[1].mxu1 }
  0xff   : > { %v486_v24 = vpop.f32.mrb[2].mxu1 }
 0x100   : > { %v489_v25 = vmax.f32 %v484_v22, 0.0  ;;  %v1071_v26 = vpop.f32.mrb[3].mxu1 }
 0x102   : > { %v490_v27 = vpack.c.bf16 %v489_v25, %v489_v25 }
 0x104   : > { %1089 = vmatmul.mubr.bf16.vlgmr.msra.gmra.mrb[4].mxu1 %v490_v27 }
 0x1d7   : > { %v596_v33 = vpop.f32.mrb[4].mxu1 }
 0x1d8   : > { %v597_v34 = vadd.f32 %v1004_v32, %v596_v33  ;;  %v1090_v35 = vpop.f32.mrb[5].mxu1 }
 0x1d9   : > { %v599_v36 = vpop.f32.mrb[6].mxu1 }
 0x1da   : > { %v602_v37 = vmax.f32 %v597_v34, 0.0  ;;  %v1091_v38 = vpop.f32.mrb[7].mxu1 }
 0x1dc   : > { %v603_v40 = vpack.c.bf16 %v602_v37, %v602_v37 }
 0x1de   : > { %1021 = vmatmul.mubr.msk.bf16.vlgmr.msra.gmra.mrb[0].mxu0 %vm445_vm1, %v603_v40  ;;  %605 = vst.msk [vmem:[%s1508_s13] sm:$0xf] %vm604_vm2, %v603_v40 }
 0x1df   : > { %1093 = vmatpush3.bf16.msra.mxu0 %v1183_v39  ;;  %1108 = vmatprep.mubr.msk.bf16.mxu0 %vm1292_vm0, %v1291_v1 }
 0x1e0   : > { %1094 = vmatprep.subr.bf16.mxu0 %v1291_v1 }
 0x1e3   : > { %1095 = vmatpush3.bf16.msra.mxu0 %v1184_v41 }
 0x1e4   : > { %1096 = vmatprep.subr.bf16.mxu0 %v1291_v1 }
 0x1e7   : > { %1097 = vmatpush3.bf16.msra.mxu0 %v1185_v42 }
 0x1e8   : > { %1098 = vmatprep.subr.bf16.mxu0 %v1291_v1 }
 0x1eb   : > { %1099 = vmatpush3.bf16.msra.mxu0 %v1186_v43 }
 0x1ec   : > { %1100 = vmatprep.subr.bf16.mxu0 %v1291_v1 }
 0x1ef   : > { %1101 = vmatpush3.bf16.msra.mxu0 %v1187_v44 }
 0x1f0   : > { %1102 = vmatprep.subr.bf16.mxu0 %v1291_v1 }
 0x1f3   : > { %1103 = vmatpush3.bf16.msra.mxu0 %v1188_v45 }
 0x1f4   : > { %1104 = vmatprep.subr.bf16.mxu0 %v1291_v1 }
 0x1f7   : > { %1105 = vmatpush3.bf16.msra.mxu0 %v1189_v46 }
 0x1f8   : > { %1106 = vmatprep.subr.bf16.mxu0 %v1291_v1 }
 0x1fb   : > { %1107 = vmatpush3.bf16.msra.mxu0 %v1190_v47 }
 0x2b1   : > { %v703_v55 = vpop.f32.mrb[0].mxu0 }
 0x2b2   : > { %v704_v56 = vadd.f32 %v703_v55, %v619_v53  ;;  %v705_v57 = vpop.f32.mrb[1].mxu0 }
 0x2b3   : > { %v706_v58 = vadd.f32 %v705_v57, %v623_v54  ;;  %v707_v59 = vpop.f32.mrb[2].mxu0 }
 0x2b4   : > { %v708_v60 = vpop.f32.mrb[3].mxu0  ;;  %710 = vmax.xlane.f32.xlu0 %v704_v56 }
 0x2b5   : > { %v721_v61 = vmax.f32 %v706_v58, 0.0 }
 0x2b7   : > { %v722_v62 = vpack.c.bf16 %v721_v61, %v721_v61 }
 0x2b9   : > { %1109 = vmatmul.mubr.bf16.vlgmr.msra.gmra.mrb[4].mxu0 %v722_v62 }
 0x341   : > { %v711_v63 = vpop.xlane.xlu0 %710 }
 0x342   : > { %v712_v0 = vsub.f32 %v704_v56, %v711_v63 }
 0x344   : > { %v713_v1 = vmul.f32 1.442695, %v712_v0 }
 0x346   : > { %1191 = vpow2.f32 %v713_v1 }
 0x350   : > { %v1545_v2 = vpop.eup %1191 }
 0x351   : > { %715 = vadd.xlane.f32.xlu0 %v1545_v2 }
 0x352   : > { %1208 = shalt.err (!%p1205_p3)
}
 0x353   : > { %s1209_s13 = scalar_lea.hbm %s1555_s12, 64  ;;  %s1213_s30 = scalar_lea.hbm %s1644_s9, 128 }
 0x354   : > { %p1210_p4 = scmp.ne.s32.totalorder %s1555_s12, %s1209_s13  ;;  %p1214_p9 = scmp.lt.u32.totalorder %s1555_s12, %s1644_s9 }
 0x355   : > { %p1215_p10 = scmp.lt.u32.totalorder %s1213_s30, %s1209_s13  ;;  %p1217_p12 = scmp.lt.u32.totalorder %s1209_s13, %s1555_s12 }
 0x356   : > { %p1211_p7 = pnand %p1210_p4, %p1394_p5 }
 0x357   : > { %p1216_p11 = por %p1215_p10, %p1214_p9 }
 0x358   : > { %p1212_p8 = pneg %p1211_p7 }
 0x359   : > { %p1218_p13 = por %p1217_p12, %p1216_p11 }
 0x35b   : > { %p1219_p0 = pnand %p1218_p13, %p1212_p8 }
 0x35d   : > { %1222 = shalt.err (!%p1219_p0)
}
 0x35e   : > { %1112 = dma.vmem_to_hbm [thread:$0]  (%p1394_p5), %s860_s24, 64, %s1555_s12, %s837_s15   ;;  %v1022_v3 = vld [vmem:[%s1643_s8] ss:$0 sm:$0xff] }
 0x35f   : > { %s1659_s26 = sshll.u32 %s1499_s29, 2  ;;  %s1660_s13 = sshll.u32 %s1377_s21, 6 }
 0x360   : > { %s394_s25 = scalar_lea.vmem [#allocation4], %s1659_s26  ;;  %s1585_s2 = scalar_lea.hbm %s1646_s11, %s1660_s13 }
 0x361   : > { %s875_s22 = sshll.u32 %s394_s25, 4  ;;  %s846_s24 = scalar_lea.sflag [#allocation5], %s1499_s29  ;;  %s1587_s22 = int_to_ptr.vmem [resolvable:$true] %s875_s22 }
 0x362   : > { %s1223_s12 = scalar_lea.vmem %s1587_s22, 64  ;;  %s1295_s15 = smov [#allocation4]  }
 0x363   : > { %p1224_p1 = scmp.ne.s32.totalorder %s1587_s22, %s1223_s12  ;;  %s1227_s21 = sshll.u32 %s1295_s15, 4  ;;  %s1228_s21 = int_to_ptr.vmem [resolvable:$false] %s1227_s21 }
 0x364   : > { %s1229_s1 = scalar_lea.vmem %s1228_s21, 128  ;;  %p1230_p4 = scmp.lt.s32.totalorder %s1587_s22, %s1228_s21 }
 0x365   : > { %p1225_p2 = pnand %p1224_p1, %p1394_p5  ;;  %p1231_p7 = scmp.lt.s32.totalorder %s1229_s1, %s1223_s12 }
 0x367   : > { %p1226_p3 = pneg %p1225_p2  ;;  %p1232_p8 = por %p1231_p7, %p1230_p4 }
 0x369   : > { %p1233_p9 = pnand %p1232_p8, %p1226_p3 }
 0x38c   : > { %v828_v4 = vpop.f32.mrb[4].mxu0 }
 0x38d   : > { %v829_v5 = vadd.f32 %v1022_v3, %v828_v4  ;;  %v1110_v6 = vpop.f32.mrb[5].mxu0 }
 0x38e   : > { %v831_v7 = vpop.f32.mrb[6].mxu0 }
 0x38f   : > { %v834_v8 = vpack.c.bf16 %v829_v5, %v829_v5  ;;  %v1111_v9 = vpop.f32.mrb[7].mxu0 }
 0x391   : > { %835 = vst.msk [vmem:[%s394_s25] sm:$0xf] %vm604_vm2, %v834_v8 }
 0x392   : > { %1236 = shalt.err (!%p1233_p9)
}
 0x393   : > { %s1237_s29 = scalar_lea.hbm %s1585_s2, 64  ;;  %s1241_s25 = scalar_lea.hbm %s1646_s11, 128 }
 0x394   : > { %p1238_p10 = scmp.ne.s32.totalorder %s1585_s2, %s1237_s29  ;;  %p1242_p13 = scmp.lt.u32.totalorder %s1585_s2, %s1646_s11 }
 0x395   : > { %p1243_p0 = scmp.lt.u32.totalorder %s1241_s25, %s1237_s29  ;;  %p1245_p2 = scmp.lt.u32.totalorder %s1237_s29, %s1585_s2 }
 0x396   : > { %p1239_p11 = pnand %p1238_p10, %p1394_p5 }
 0x397   : > { %p1244_p1 = por %p1243_p0, %p1242_p13 }
 0x398   : > { %p1240_p12 = pneg %p1239_p11 }
 0x399   : > { %p1246_p3 = por %p1245_p2, %p1244_p1 }
 0x39b   : > { %p1247_p4 = pnand %p1246_p3, %p1240_p12 }
 0x39d   : > { %1250 = shalt.err (!%p1247_p4)
}
 0x39e   : > { %1113 = dma.vmem_to_hbm [thread:$0]  (%p1394_p5), %s1587_s22, 64, %s1585_s2, %s846_s24   ;;  %vm719_vm3 = vcmask 23552  }
 0x39f   : > { %s1661_s0 = sshll.u32 %s1416_s14, 3 }
 0x3a0   : > { %s402_s21 = scalar_lea.vmem %s1645_s10, %s1661_s0 }
 0x3de   : > { %v716_v10 = vpop.xlane.xlu0 %715 }
 0x3df   : > { %1193 = vrcp.f32 %v716_v10 }
 0x3e9   : > { %v1194_v11 = vpop.eup %1193 }
 0x3ea   : > { %v718_v12 = vmul.f32 %v1194_v11, %v1545_v2 }
 0x3ec   : > { %720 = vst.msk [vmem:[%s402_s21] sm:$0xff] %vm719_vm3, %v718_v12 }
 0x3ed PF: > { %p1123_p7 = scmp.ge.s32.totalorder %s1289_s20, 2  ;;  %s887_s27 = sand.u32 1, %s1277_s17  }
 0x3ee   : > { %s888_s2 = scalar_lea.sflag [#allocation3], %s887_s27 }
 0x3ef   : > { %p1117_p5 = pnand %p1123_p7, %p1398_p6 }
 0x3f1   : > { %1268 = dma.done.wait (!%p1117_p5), %s888_s2, 64  }
 0x3f2   : > { %1270 = vsyncadd (!%p1117_p5), %s888_s2, 4294967232  ;;  %s904_s14 = scalar_lea.sflag [#allocation5], %s887_s27 }
 0x3f3   : > { %1272 = dma.done.wait (!%p1117_p5), %s904_s14, 64  }
 0x3f4   : > { %1274 = vsyncadd (!%p1117_p5), %s904_s14, 4294967232  ;;  %s1662_s22 = sld [smem:[#allocation8_spill]]  ;;  %p25_p8 = scmp.ge.s32.totalorder %s1381_s23, 4  }
 0x3f5   : > { %s1663_s17 = smov %s1281_s18  ;;  %s1664_s18 = smov %s1285_s19 }
 0x3f6   : > { %s1666_s20 = smov %s1381_s23  ;;  %27 = sbr.rel (!%p25_p8) target bundleno = 9 (0x9), region = 120 }
 0x3fa   : > { %s1665_s19 = smov %s1662_s22 }
 0x3fd   :  { %909 = vsyncpa [#allocation3], 1 }
 0x3fe   :  { %911 = vsyncpa [#allocation3 + $0x1], 1 }
 0x3ff   :  { %912 = vsyncpa [#allocation5], 1 }
 0x400   :  { %914 = vsyncpa [#allocation5 + $0x1], 1 }

</bundles_post_ra>
